<compile_context>
chip_gen: v7x
topology: tpu7x:2x2x1
jax: 0.10.0
libtpu: 0.0.40
codegen_flags: <defaults>
</compile_context>

<pallas_src>
import functools

import jax
import jax.numpy as jnp
from jax.experimental import pallas as pl
from jax.experimental.pallas import tpu as pltpu


# ----------------------------------------------------------------------------
# Sizing helpers (generation aware).
# ----------------------------------------------------------------------------
def _round_up(x: int, m: int) -> int:
    return ((x + m - 1) // m) * m


@functools.lru_cache(maxsize=1)
def _vmem_capacity_bytes() -> int:
    try:
        return int(pltpu.get_tpu_info().vmem_capacity_bytes)
    except Exception:
        return 64 << 20  # conservative fallback (v7x-sized VMEM)


def _block_budget_bytes() -> int:
    # ~1/12 of (VMEM - headroom): 2 inputs x 2 pipeline buffers plus ~6
    # block-sized f32 temporaries must co-reside.  v7x (64 MiB) -> ~4 MiB
    # blocks; v5e/v6e (128 MiB) -> ~9 MiB blocks.
    cap = _vmem_capacity_bytes()
    return max(1 << 20, (cap - (16 << 20)) // 12)


def _vmem_limit_bytes(block_elems: int, in_itemsize: int) -> int:
    cap = _vmem_capacity_bytes()
    est = 2 * 2 * block_elems * in_itemsize   # 2 inputs x 2 pipeline buffers
    est += 7 * block_elems * 4                # f32 in-kernel temporaries
    est += 2 << 20
    return int(min(cap - (8 << 20), max(16 << 20, est)))


def _sublane_pack(dtype) -> int:
    # Native packed-sublane granularity: f32 -> 8, bf16 -> 16, int8/fp8 -> 32.
    bits = jnp.dtype(dtype).itemsize * 8
    return max(8, 256 // bits)


# ----------------------------------------------------------------------------
# Kernels.
# ----------------------------------------------------------------------------
def _kd_kernel_lane_major(fs_ref, ft_ref, partial_ref, *, inv_T, tl, n_valid,
                          mask_cols):
    """[C, TL] block: classes on sublanes, samples on lanes (lane-dense)."""
    fs = fs_ref[...].astype(jnp.float32) * inv_T
    ft = ft_ref[...].astype(jnp.float32) * inv_T

    # Student: only log Z_s is needed (stable shift-by-max).
    fs_max = jnp.max(fs, axis=0, keepdims=True)                    # [1, TL]
    fs_shift = fs - fs_max
    log_z_s = jnp.log(jnp.sum(jnp.exp(fs_shift), axis=0, keepdims=True))

    # Teacher: unnormalized probabilities + partition function.
    ft_max = jnp.max(ft, axis=0, keepdims=True)
    ft_shift = ft - ft_max
    exp_t = jnp.exp(ft_shift)
    z_t = jnp.sum(exp_t, axis=0, keepdims=True)
    log_z_t = jnp.log(z_t)

    num = jnp.sum(exp_t * (ft_shift - fs_shift), axis=0, keepdims=True)
    kl = num * pl.reciprocal(z_t, approx=False) + (log_z_s - log_z_t)  # [1, TL]

    if mask_cols:
        col = jax.lax.broadcasted_iota(jnp.int32, kl.shape, 1)
        col = col + pl.program_id(0) * tl
        kl = jnp.where(col < n_valid, kl, 0.0)
    partial_ref[0, 0] = jnp.sum(kl)


def _kd_kernel_row_major(fs_ref, ft_ref, partial_ref, *, inv_T, tb, n_valid,
                         mask_rows):
    """[TB, C] block: samples on sublanes, classes on lanes (C >= 128)."""
    fs = fs_ref[...].astype(jnp.float32) * inv_T
    ft = ft_ref[...].astype(jnp.float32) * inv_T

    fs_max = jnp.max(fs, axis=1, keepdims=True)                    # [TB, 1]
    fs_shift = fs - fs_max
    log_z_s = jnp.log(jnp.sum(jnp.exp(fs_shift), axis=1, keepdims=True))

    ft_max = jnp.max(ft, axis=1, keepdims=True)
    ft_shift = ft - ft_max
    exp_t = jnp.exp(ft_shift)
    z_t = jnp.sum(exp_t, axis=1, keepdims=True)
    log_z_t = jnp.log(z_t)

    num = jnp.sum(exp_t * (ft_shift - fs_shift), axis=1, keepdims=True)
    kl = num * pl.reciprocal(z_t, approx=False) + (log_z_s - log_z_t)  # [TB, 1]

    if mask_rows:
        row = jax.lax.broadcasted_iota(jnp.int32, kl.shape, 0)
        row = row + pl.program_id(0) * tb
        kl = jnp.where(row < n_valid, kl, 0.0)
    partial_ref[0, 0] = jnp.sum(kl)


# ----------------------------------------------------------------------------
# Per-pair wrappers (return sum over samples of KL(p_t || p_s) * T^2).
# ----------------------------------------------------------------------------
def _kd_loss_lane_major(fs_t, ft_t, T, tl=None):
    """fs_t/ft_t are [C, N] (transposed); tiles N along the lane axis."""
    C, N = fs_t.shape
    if tl is None:
        budget = _block_budget_bytes()
        tl = max(128, (budget // (C * 4)) // 128 * 128)
        if N * C * 4 >= (2 << 20):
            # Big enough to matter: keep >= 2 blocks so both TCs get work.
            tl = min(tl, _round_up(pl.cdiv(N, 2), 128))
    if tl >= N:
        tl = N                   # single full-extent block, no masking needed
        g = 1
        mask_cols = False
    else:
        assert tl % 128 == 0
        g = pl.cdiv(N, tl)
        mask_cols = (N % tl) != 0

    kernel = functools.partial(_kd_kernel_lane_major, inv_T=1.0 / float(T),
                               tl=tl, n_valid=N, mask_cols=mask_cols)
    partials = pl.pallas_call(
        kernel,
        out_shape=jax.ShapeDtypeStruct((g, 1), jnp.float32),
        grid=(g,),
        in_specs=[
            pl.BlockSpec((C, tl), lambda i: (0, i)),
            pl.BlockSpec((C, tl), lambda i: (0, i)),
        ],
        out_specs=pl.BlockSpec((1, 1), lambda i: (i, 0),
                               memory_space=pltpu.MemorySpace.SMEM),
        compiler_params=pltpu.CompilerParams(
            dimension_semantics=("parallel",),
            vmem_limit_bytes=_vmem_limit_bytes(
                C * tl, jnp.dtype(fs_t.dtype).itemsize),
        ),
    )(fs_t, ft_t)
    return jnp.sum(partials) * (float(T) ** 2)


def _kd_loss_row_major(fs, ft, T, tb=None):
    """fs/ft are [N, C] with C >= 128 (already lane-dense); tiles N rows."""
    N, C = fs.shape
    pack = _sublane_pack(fs.dtype)
    if tb is None:
        budget = _block_budget_bytes()
        tb = max(pack, (budget // (C * 4)) // pack * pack)
        if N * C * 4 >= (2 << 20):
            tb = min(tb, _round_up(pl.cdiv(N, 2), pack))
    if tb >= N:
        tb = N                   # single full-extent block, no masking needed
        g = 1
        mask_rows = False
    else:
        assert tb % pack == 0
        g = pl.cdiv(N, tb)
        mask_rows = (N % tb) != 0

    kernel = functools.partial(_kd_kernel_row_major, inv_T=1.0 / float(T),
                               tb=tb, n_valid=N, mask_rows=mask_rows)
    partials = pl.pallas_call(
        kernel,
        out_shape=jax.ShapeDtypeStruct((g, 1), jnp.float32),
        grid=(g,),
        in_specs=[
            pl.BlockSpec((tb, C), lambda i: (i, 0)),
            pl.BlockSpec((tb, C), lambda i: (i, 0)),
        ],
        out_specs=pl.BlockSpec((1, 1), lambda i: (i, 0),
                               memory_space=pltpu.MemorySpace.SMEM),
        compiler_params=pltpu.CompilerParams(
            dimension_semantics=("parallel",),
            vmem_limit_bytes=_vmem_limit_bytes(
                tb * C, jnp.dtype(fs.dtype).itemsize),
        ),
    )(fs, ft)
    return jnp.sum(partials) * (float(T) ** 2)


def kd_pair_loss(fs, ft, T):
    """sum_n KL(softmax(ft_n/T) || softmax(fs_n/T)) * T^2 for one [N, C] pair."""
    assert fs.ndim == 2 and fs.shape == ft.shape
    _N, C = fs.shape
    if C < 128:
        # Small class count (the common KD case): present a lane-dense [C, N]
        # slab so the per-sample reductions are sublane/VALU work and lanes
        # are fully used; the transpose is cheaper than being XLU-bound.
        return _kd_loss_lane_major(fs.T, ft.T, T)
    # TODO(synk): for very large C (block won't fit VMEM) or C not a multiple
    # of 128, a channel-tiled / padded-and-masked variant would be needed;
    # left as full-extent-C blocks here to avoid extra HBM copies.
    return _kd_loss_row_major(fs, ft, T)


# ----------------------------------------------------------------------------
# Module port.
# ----------------------------------------------------------------------------
class KD:
    """JAX/Pallas port of the PyTorch KD distillation loss."""

    def __init__(self, T: float = 3.0):
        self.T = float(T)

    def __call__(self, feat_s, feat_t, epoch_ratio=None):
        loss = jnp.float32(0.0)
        cnt = 0
        for fs, ft in zip(feat_s, feat_t):
            if fs.ndim == 2 and fs.shape == ft.shape:
                loss = loss + kd_pair_loss(fs, ft, self.T) / fs.shape[0]
                cnt += 1
        if cnt == 0:
            # Mirrors PyTorch's (int 0 / 0) behaviour.
            raise ZeroDivisionError("KD: no 2-D shape-matched feature pairs")
        return loss / cnt


# ----------------------------------------------------------------------------
# Pure-JAX references (sanity checks).
# ----------------------------------------------------------------------------
def _ref_pair_sum_kl(fs, ft, T):
    log_p_s = jax.nn.log_softmax(fs.astype(jnp.float32) / T, axis=1)
    p_t = jax.nn.softmax(ft.astype(jnp.float32) / T, axis=1)
    return jnp.sum(p_t * (jnp.log(p_t) - log_p_s)) * T * T


def _reference(feat_s, feat_t, T):
    loss = 0.0
    cnt = 0
    for fs, ft in zip(feat_s, feat_t):
        if fs.ndim == 2 and fs.shape == ft.shape:
            loss = loss + _ref_pair_sum_kl(fs, ft, T) / fs.shape[0]
            cnt += 1
    return loss / cnt


if __name__ == "__main__":
    key = jax.random.PRNGKey(0)
    ks = jax.random.split(key, 12)

    B, C, H, W = 2, 4, 16, 16   # 4-D conv features (skipped by KD, like PyTorch)
    feat_s = [
        jax.random.normal(ks[0], (B, C, H, W), jnp.float32),   # not 2-D -> skipped
        jax.random.normal(ks[1], (8, 32), jnp.float32),        # small-C lane path
        jax.random.normal(ks[2], (8, 32), jnp.float32),
        jax.random.normal(ks[3], (8, 256), jnp.float32),       # wide-C row path
    ]
    feat_t = [
        jax.random.normal(ks[4], (B, C, H, W), jnp.float32),
        jax.random.normal(ks[5], (8, 32), jnp.float32),
        jax.random.normal(ks[6], (8, 32), jnp.float32),
        jax.random.normal(ks[7], (8, 256), jnp.float32),
    ]

    kd = KD(T=3.0)
    loss = jax.block_until_ready(kd(feat_s, feat_t, epoch_ratio=0.5))
    ref = _reference(feat_s, feat_t, 3.0)
    assert jnp.allclose(loss, ref, rtol=1e-4, atol=1e-5), (loss, ref)

    # Ragged-tile masking paths (force small tiles on a non-divisible N).
    fs_m = jax.random.normal(ks[8], (200, 32), jnp.float32)
    ft_m = jax.random.normal(ks[9], (200, 32), jnp.float32)
    got = jax.block_until_ready(_kd_loss_lane_major(fs_m.T, ft_m.T, 3.0, tl=128))
    want = _ref_pair_sum_kl(fs_m, ft_m, 3.0)
    assert jnp.allclose(got, want, rtol=1e-4, atol=1e-4), (got, want)

    fs_r = jax.random.normal(ks[10], (200, 256), jnp.float32)
    ft_r = jax.random.normal(ks[11], (200, 256), jnp.float32)
    got = jax.block_until_ready(_kd_loss_row_major(fs_r, ft_r, 3.0, tb=64))
    want = _ref_pair_sum_kl(fs_r, ft_r, 3.0)
    assert jnp.allclose(got, want, rtol=1e-4, atol=1e-4), (got, want)

    print("KERNEL_OK")
</pallas_src>

<mosaic_0001>
module attributes {stable_mosaic.version = 11 : i64} {
  func.func @_kd_kernel_lane_major(%arg0: i32, %arg1: memref<32x8xf32, #tpu.memory_space<vmem>>, %arg2: memref<32x8xf32, #tpu.memory_space<vmem>>, %arg3: memref<1x1xf32, #tpu.memory_space<smem>>) attributes {dimension_semantics = [#tpu.dimension_semantics<parallel>], iteration_bounds = array<i64: 1>, scalar_prefetch = 0 : i64, scratch_operands = 0 : i64, tpu.core_type = #tpu.core_type<tc>, window_params = [{transform_indices = @transform_0, window_bounds = array<i64: 32, 8>}, {transform_indices = @transform_1, window_bounds = array<i64: 32, 8>}, {transform_indices = @transform_2, window_bounds = array<i64: 1, 1>}]} {
    %c0 = arith.constant 0 : index
    %c0_0 = arith.constant 0 : index
    %0 = vector.load %arg1[%c0, %c0_0] : memref<32x8xf32, #tpu.memory_space<vmem>>, vector<32x8xf32>
    %cst = arith.constant 0.333333343 : f32
    %1 = vector.broadcast %cst : f32 to vector<32x8xf32>
    %2 = arith.mulf %0, %1 : vector<32x8xf32>
    %c0_1 = arith.constant 0 : index
    %c0_2 = arith.constant 0 : index
    %3 = vector.load %arg2[%c0_1, %c0_2] : memref<32x8xf32, #tpu.memory_space<vmem>>, vector<32x8xf32>
    %cst_3 = arith.constant 0.333333343 : f32
    %4 = vector.broadcast %cst_3 : f32 to vector<32x8xf32>
    %5 = arith.mulf %3, %4 : vector<32x8xf32>
    %cst_4 = arith.constant dense<0xFF800000> : vector<8xf32>
    %6 = vector.multi_reduction <maximumf>, %2, %cst_4 [0] : vector<32x8xf32> to vector<8xf32>
    %7 = vector.shape_cast %6 : vector<8xf32> to vector<1x8xf32>
    %8 = vector.broadcast %7 : vector<1x8xf32> to vector<32x8xf32>
    %9 = arith.subf %2, %8 : vector<32x8xf32>
    %10 = math.exp %9 : vector<32x8xf32>
    %cst_5 = arith.constant dense<0.000000e+00> : vector<8xf32>
    %11 = vector.multi_reduction <add>, %10, %cst_5 [0] : vector<32x8xf32> to vector<8xf32>
    %12 = vector.shape_cast %11 : vector<8xf32> to vector<1x8xf32>
    %13 = math.log %12 : vector<1x8xf32>
    %cst_6 = arith.constant dense<0xFF800000> : vector<8xf32>
    %14 = vector.multi_reduction <maximumf>, %5, %cst_6 [0] : vector<32x8xf32> to vector<8xf32>
    %15 = vector.shape_cast %14 : vector<8xf32> to vector<1x8xf32>
    %16 = vector.broadcast %15 : vector<1x8xf32> to vector<32x8xf32>
    %17 = arith.subf %5, %16 : vector<32x8xf32>
    %18 = math.exp %17 : vector<32x8xf32>
    %cst_7 = arith.constant dense<0.000000e+00> : vector<8xf32>
    %19 = vector.multi_reduction <add>, %18, %cst_7 [0] : vector<32x8xf32> to vector<8xf32>
    %20 = vector.shape_cast %19 : vector<8xf32> to vector<1x8xf32>
    %21 = math.log %20 : vector<1x8xf32>
    %22 = arith.subf %17, %9 : vector<32x8xf32>
    %23 = arith.mulf %18, %22 : vector<32x8xf32>
    %cst_8 = arith.constant dense<0.000000e+00> : vector<8xf32>
    %24 = vector.multi_reduction <add>, %23, %cst_8 [0] : vector<32x8xf32> to vector<8xf32>
    %25 = vector.shape_cast %24 : vector<8xf32> to vector<1x8xf32>
    %26 = tpu.reciprocal %20 : vector<1x8xf32> -> vector<1x8xf32>
    %27 = arith.mulf %25, %26 : vector<1x8xf32>
    %28 = arith.subf %13, %21 : vector<1x8xf32>
    %29 = arith.addf %27, %28 : vector<1x8xf32>
    %30 = vector.shape_cast %29 : vector<1x8xf32> to vector<1x1x8xf32>
    %cst_9 = arith.constant dense<0.000000e+00> : vector<1xf32>
    %31 = vector.multi_reduction <add>, %30, %cst_9 [1, 2] : vector<1x1x8xf32> to vector<1xf32>
    %32 = vector.shape_cast %31 : vector<1xf32> to vector<1x1x1xf32>
    %33 = vector.extract %32[0, 0, 0] : f32 from vector<1x1x1xf32>
    %c0_10 = arith.constant 0 : index
    %c0_11 = arith.constant 0 : index
    %34 = memref.load %arg3[%c0_10, %c0_11] : memref<1x1xf32, #tpu.memory_space<smem>>
    memref.store %33, %arg3[%c0_10, %c0_11] : memref<1x1xf32, #tpu.memory_space<smem>>
    return
  }
  func.func @transform_0(%arg0: i32) -> (i32, i32) {
    %c0_i32 = arith.constant 0 : i32
    %c0_i32_0 = arith.constant 0 : i32
    return %c0_i32, %arg0 : i32, i32
  }
  func.func @transform_1(%arg0: i32) -> (i32, i32) {
    %c0_i32 = arith.constant 0 : i32
    %c0_i32_0 = arith.constant 0 : i32
    return %c0_i32, %arg0 : i32, i32
  }
  func.func @transform_2(%arg0: i32) -> (i32, i32) {
    %c0_i32 = arith.constant 0 : i32
    %c0_i32_0 = arith.constant 0 : i32
    return %arg0, %c0_i32 : i32, i32
  }
}

</mosaic_0001>

<bundles_post_ra>
// kernel: tpu_custom_call.1
= control target key start
LH: loop header
LB: loop body
LE: loop exit
PB: predicated region body
PF: predicated region fallthrough
CT: control target
= control target key end

     0   :  { %vm28_vm0 = vcmask 64512   ;;  %s269_s0 = inlined_call_operand.vmem [shape: f32[32,8], index: 0, kind: input, shape index: {}]   ;;  %s270_s1 = inlined_call_operand.vmem [shape: f32[32,8], index: 1, kind: input, shape index: {}]   ;;  %s271_s2 = inlined_call_operand.hbm [shape: f32[1,1], index: 2, kind: output, shape index: {}]  }
   0x1   :  { %v12_v0 = vld [vmem:[%s269_s0] sm:$0xff]  ;;  %v13_v1 = vld [vmem:[%s269_s0 + $0x8] sm:$0xff]  ;;  %v14_v2 = vld [vmem:[%s269_s0 + $0x10] sm:$0xff] }
   0x2   :  { %v15_v3 = vld [vmem:[%s269_s0 + $0x18] sm:$0xff]  ;;  %v16_v4 = vmul.f32 0.33333334, %v12_v0  ;;  %v17_v5 = vmul.f32 0.33333334, %v13_v1  ;;  %v20_v6 = vld [vmem:[%s270_s1] sm:$0xff] }
   0x3   :  { %v18_v7 = vmul.f32 0.33333334, %v14_v2  ;;  %v19_v8 = vmul.f32 0.33333334, %v15_v3  ;;  %v21_v9 = vld [vmem:[%s270_s1 + $0x8] sm:$0xff]  ;;  %v22_v10 = vld [vmem:[%s270_s1 + $0x10] sm:$0xff] }
   0x4   :  { %v23_v11 = vld [vmem:[%s270_s1 + $0x18] sm:$0xff]  ;;  %v24_v12 = vmul.f32 0.33333334, %v20_v6  ;;  %v25_v13 = vmul.f32 0.33333334, %v21_v9  ;;  %v29_v14 = vsel %vm28_vm0, %v16_v4, -inf }
   0x5   :  { %v26_v15 = vmul.f32 0.33333334, %v22_v10  ;;  %v27_v16 = vmul.f32 0.33333334, %v23_v11  ;;  %v30_v17 = vsel %vm28_vm0, %v17_v5, -inf  ;;  %v31_v18 = vsel %vm28_vm0, %v18_v7, -inf }
   0x6   :  { %v32_v19 = vsel %vm28_vm0, %v19_v8, -inf  ;;  %v33_v20 = vmax.f32 %v29_v14, %v30_v17  ;;  %v69_v21 = vsel %vm28_vm0, %v24_v12, -inf  ;;  %v70_v22 = vsel %vm28_vm0, %v25_v13, -inf }
   0x7   :  { %7 = vsyncpa [#allocation3], 0  ;;  %v34_v23 = vmax.f32 %v31_v18, %v32_v19  ;;  %v71_v24 = vsel %vm28_vm0, %v26_v15, -inf  ;;  %v72_v25 = vsel %vm28_vm0, %v27_v16, -inf  ;;  %v73_v26 = vmax.f32 %v69_v21, %v70_v22  ;;  %s185_s26 = scalar_lea.hbm %s271_s2, 16 }
   0x8   :  { %v74_v27 = vmax.f32 %v71_v24, %v72_v25  ;;  %vm134_vm1 = vcmask 57344   ;;  %p186_p0 = scmp.ne.s32.totalorder %s271_s2, %s185_s26  ;;  %p189_p1 = scmp.lt.u32.totalorder %s185_s26, %s271_s2 }
   0x9   :  { %v35_v28 = vmax.f32 %v33_v20, %v34_v23 }
   0xa   :  { %v75_v29 = vmax.f32 %v73_v26, %v74_v27  ;;  %p191_p2 = pnand %p189_p1, %p186_p0 }
   0xb   :  { %v36_v30 = vrot.slane %v35_v28, 4 }
   0xc   :  { %v76_v31 = vrot.slane %v75_v29, 4 }
   0xd   :  { %v37_v32 = vmax.f32 %v35_v28, %v36_v30 }
   0xe   :  { %v77_v33 = vmax.f32 %v75_v29, %v76_v31 }
   0xf   :  { %v38_v34 = vrot.slane %v37_v32, 2 }
  0x10   :  { %v78_v35 = vrot.slane %v77_v33, 2 }
  0x11   :  { %v39_v36 = vmax.f32 %v37_v32, %v38_v34 }
  0x12   :  { %v79_v37 = vmax.f32 %v77_v33, %v78_v35 }
  0x13   :  { %v40_v38 = vrot.slane %v39_v36, 1 }
  0x14   :  { %v80_v39 = vrot.slane %v79_v37, 1 }
  0x15   :  { %v41_v40 = vmax.f32 %v39_v36, %v40_v38 }
  0x16   :  { %v81_v41 = vmax.f32 %v79_v37, %v80_v39 }
  0x17   :  { %v42_v42 = vsub.f32 %v16_v4, %v41_v40  ;;  %v43_v43 = vsub.f32 %v17_v5, %v41_v40  ;;  %v44_v44 = vsub.f32 %v18_v7, %v41_v40  ;;  %v45_v45 = vsub.f32 %v19_v8, %v41_v40 }
  0x18   :  { %v82_v46 = vsub.f32 %v24_v12, %v81_v41  ;;  %v83_v47 = vsub.f32 %v25_v13, %v81_v41  ;;  %v84_v51 = vsub.f32 %v26_v15, %v81_v41  ;;  %v85_v53 = vsub.f32 %v27_v16, %v81_v41 }
  0x19   :  { %v46_v48 = vmul.f32 1.442695, %v42_v42  ;;  %v48_v49 = vmul.f32 1.442695, %v43_v43  ;;  %v50_v50 = vmul.f32 1.442695, %v44_v44 }
  0x1a   :  { %v52_v52 = vmul.f32 1.442695, %v45_v45  ;;  %v86_v54 = vmul.f32 1.442695, %v82_v46  ;;  %v88_v55 = vmul.f32 1.442695, %v83_v47  ;;  %v109_v61 = vsub.f32 %v82_v46, %v42_v42 }
  0x1b   :  { %163 = vpow2.f32 %v46_v48  ;;  %v90_v56 = vmul.f32 1.442695, %v84_v51  ;;  %v92_v57 = vmul.f32 1.442695, %v85_v53  ;;  %v110_v0 = vsub.f32 %v83_v47, %v43_v43 }
  0x1c   :  { %165 = vpow2.f32 %v48_v49  ;;  %v111_v4 = vsub.f32 %v84_v51, %v44_v44  ;;  %v112_v7 = vsub.f32 %v85_v53, %v45_v45 }
  0x1d   :  { %167 = vpow2.f32 %v50_v50 }
  0x1e   :  { %169 = vpow2.f32 %v52_v52 }
  0x1f   :  { %171 = vpow2.f32 %v86_v54 }
  0x20   :  { %173 = vpow2.f32 %v88_v55 }
  0x21   :  { %175 = vpow2.f32 %v90_v56 }
  0x22   :  { %177 = vpow2.f32 %v92_v57 }
  0x25   :  { %v164_v58 = vpop.eup %163 }
  0x26   :  { %v166_v59 = vpop.eup %165  ;;  %v54_v60 = vsel %vm28_vm0, %v164_v58, 0.0 }
  0x27   :  { %v168_v62 = vpop.eup %167  ;;  %v55_v63 = vsel %vm28_vm0, %v166_v59, 0.0 }
  0x28   :  { %v170_v1 = vpop.eup %169  ;;  %v56_v2 = vadd.f32 %v55_v63, %v54_v60  ;;  %v57_v3 = vsel %vm28_vm0, %v168_v62, 0.0 }
  0x29   :  { %v172_v5 = vpop.eup %171  ;;  %v59_v6 = vsel %vm28_vm0, %v170_v1, 0.0 }
  0x2a   :  { %v174_v8 = vpop.eup %173  ;;  %v58_v9 = vadd.f32 %v57_v3, %v56_v2  ;;  %v94_v10 = vsel %vm28_vm0, %v172_v5, 0.0  ;;  %v113_v11 = vmul.f32 %v172_v5, %v109_v61 }
  0x2b   :  { %v176_v12 = vpop.eup %175  ;;  %v95_v13 = vsel %vm28_vm0, %v174_v8, 0.0  ;;  %v114_v14 = vmul.f32 %v174_v8, %v110_v0 }
  0x2c   :  { %v178_v15 = vpop.eup %177  ;;  %v60_v16 = vadd.f32 %v59_v6, %v58_v9  ;;  %v96_v17 = vadd.f32 %v95_v13, %v94_v10  ;;  %v97_v18 = vsel %vm28_vm0, %v176_v12, 0.0  ;;  %v115_v19 = vmul.f32 %v176_v12, %v111_v4 }
  0x2d   :  { %v99_v20 = vsel %vm28_vm0, %v178_v15, 0.0  ;;  %v116_v21 = vmul.f32 %v178_v15, %v112_v7  ;;  %v117_v22 = vsel %vm28_vm0, %v113_v11, 0.0  ;;  %v118_v23 = vsel %vm28_vm0, %v114_v14, 0.0 }
  0x2e   :  { %v61_v24 = vrot.slane %v60_v16, 4  ;;  %v98_v25 = vadd.f32 %v97_v18, %v96_v17  ;;  %v119_v26 = vadd.f32 %v118_v23, %v117_v22  ;;  %v120_v27 = vsel %vm28_vm0, %v115_v19, 0.0 }
  0x2f   :  { %v122_v28 = vsel %vm28_vm0, %v116_v21, 0.0 }
  0x30   :  { %v62_v29 = vadd.f32 %v61_v24, %v60_v16  ;;  %v100_v30 = vadd.f32 %v99_v20, %v98_v25  ;;  %v121_v31 = vadd.f32 %v120_v27, %v119_v26 }
  0x32   :  { %v63_v32 = vrot.slane %v62_v29, 2  ;;  %v101_v33 = vrot.slane %v100_v30, 4  ;;  %v123_v34 = vadd.f32 %v122_v28, %v121_v31 }
  0x34   :  { %v64_v35 = vadd.f32 %v63_v32, %v62_v29  ;;  %v102_v36 = vadd.f32 %v101_v33, %v100_v30  ;;  %v124_v37 = vrot.slane %v123_v34, 4 }
  0x36   :  { %v65_v38 = vrot.slane %v64_v35, 1  ;;  %v103_v39 = vrot.slane %v102_v36, 2  ;;  %v125_v40 = vadd.f32 %v124_v37, %v123_v34 }
  0x38   :  { %v66_v41 = vadd.f32 %v65_v38, %v64_v35  ;;  %v104_v42 = vadd.f32 %v103_v39, %v102_v36  ;;  %v126_v44 = vrot.slane %v125_v40, 2 }
  0x3a   :  { %179 = vlog2.f32 %v66_v41  ;;  %v105_v43 = vrot.slane %v104_v42, 1  ;;  %v127_v46 = vadd.f32 %v126_v44, %v125_v40 }
  0x3c   :  { %v106_v45 = vadd.f32 %v105_v43, %v104_v42  ;;  %v128_v47 = vrot.slane %v127_v46, 1 }
  0x3e   :  { %181 = vlog2.f32 %v106_v45  ;;  %v129_v49 = vadd.f32 %v128_v47, %v127_v46 }
  0x3f   :  { %183 = vrcp.f32 %v106_v45 }
  0x44   :  { %v180_v48 = vpop.eup %179 }
  0x45   :  { %v68_v50 = vmul.f32 0.6931472, %v180_v48 }
  0x48   :  { %v182_v51 = vpop.eup %181 }
  0x49   :  { %v184_v52 = vpop.eup %183  ;;  %v108_v53 = vmul.f32 0.6931472, %v182_v51 }
  0x4a   :  { %v131_v54 = vmul.f32 %v184_v52, %v129_v49 }
  0x4b   :  { %v132_v55 = vsub.f32 %v68_v50, %v108_v53 }
  0x4d   :  { %v133_v56 = vadd.f32 %v132_v55, %v131_v54 }
  0x4f   :  { %v135_v57 = vsel %vm134_vm1, %v133_v56, 0.0 }
  0x50   :  { %136 = vadd.xlane.f32.xlu0 %v135_v57 }
  0xdd   :  { %v137_v58 = vpop.xlane.xlu0 %136 }
  0xde   :  { %v138_v59 = vrot.slane %v137_v58, 4 }
  0xe0   :  { %v139_v60 = vadd.f32 %v138_v59, %v137_v58 }
  0xe2   :  { %v140_v61 = vrot.slane %v139_v60, 2 }
  0xe4   :  { %v141_v62 = vadd.f32 %v140_v61, %v139_v60 }
  0xe6   :  { %v142_v63 = vrot.slane %v141_v62, 1 }
  0xe8   :  { %v143_v0 = vadd.f32 %v142_v63, %v141_v62 }
  0xea   :  { %160 = vpush %v143_v0 }
 0x11b   :  { %s161_s0 = spop %160 }
 0x11c   :  { %146 = sst [smem:[#allocation2]] %s161_s0 }
 0x11d   :  { %194 = shalt.err (!%p191_p2)
}
 0x11e   :  { %s197_s3 = smov [#allocation2]  }
 0x11f   :  { %154 = dma.smem_to_hbm %s197_s3, 16, %s271_s2, [#allocation3]  }
 0x120   :  { %195 = dma.done.wait [#allocation3], 16  }
 0x121   :  { %196 = vsyncadd [#allocation3], 4294967280 }
 0x122   :  { %158 = sfence }
 0x123   :  { %159 = vsyncpa [#allocation3], 1 }

</bundles_post_ra>
